<compile_context>
chip_gen: v6e
topology: v6e:2x2x1
jax: 0.10.0
libtpu: 0.0.40
codegen_flags: <defaults>
</compile_context>

<pallas_src>
import functools

import jax
import jax.numpy as jnp
from jax.experimental import pallas as pl
from jax.experimental.pallas import tpu as pltpu


LANE = 128        # vreg lane width: keep matmul K / Cout lane-dense
SUBLANE = 8
MAX_TILE_M = 512  # ~85% of HBM roofline at 512-row tiles (measured Pallas data)


def _round_up(x, m):
    return (x + m - 1) // m * m


def _choose_tile_m(m):
    m8 = _round_up(m, SUBLANE)
    if m8 <= MAX_TILE_M:
        return m8, m8
    return _round_up(m8, MAX_TILE_M), MAX_TILE_M


# ----------------------------- Pallas kernels ------------------------------ #

def _conv_bn_act_kernel(p_ref, w_ref, sb_ref, *rest, apply_relu, has_residual):
    """Fused im2col-matmul + folded BN + optional residual + ReLU.

    p_ref : [TILE_M, Kp]   bf16 im2col patches (zero padded)
    w_ref : [Kp, Coutp]    bf16 weight matrix   (zero padded)
    sb_ref: [2, Coutp]     f32 folded BN (row 0 = scale, row 1 = bias)
    rest  : (res_ref, o_ref) if has_residual else (o_ref,)
    """
    if has_residual:
        res_ref, o_ref = rest
    else:
        (o_ref,) = rest
    acc = jnp.dot(p_ref[...], w_ref[...], preferred_element_type=jnp.float32)
    sb = sb_ref[...]
    y = acc * sb[0:1, :] + sb[1:2, :]          # f32 epilogue on the VPU
    if has_residual:
        y = y + res_ref[...]
    if apply_relu:
        y = jnp.maximum(y, 0.0)
    o_ref[...] = y.astype(o_ref.dtype)


def conv_bn_act(patches, w, scale, bias, residual=None, apply_relu=True):
    """relu((patches @ w) * scale + bias [+ residual]) with an M-tiled grid.

    Returns the [M, Coutp] (channel-padded, lane-dense) result; caller slices
    channels when it needs the un-padded view.
    """
    M, K = patches.shape
    Cout = w.shape[1]
    Kp = _round_up(K, LANE)
    Coutp = _round_up(Cout, LANE)
    Mp, tile_m = _choose_tile_m(M)
    grid_m = Mp // tile_m
    has_residual = residual is not None

    # bf16 matmul operands (full-rate MXU on v6e/v7x); f32 accumulate in-kernel.
    p = jnp.zeros((Mp, Kp), jnp.bfloat16).at[:M, :K].set(patches.astype(jnp.bfloat16))
    wp = jnp.zeros((Kp, Coutp), jnp.bfloat16).at[:K, :Cout].set(w.astype(jnp.bfloat16))
    sb = (jnp.zeros((2, Coutp), jnp.float32)
          .at[0, :Cout].set(scale.astype(jnp.float32))
          .at[1, :Cout].set(bias.astype(jnp.float32)))

    in_specs = [
        pl.BlockSpec((tile_m, Kp), lambda i: (i, 0)),
        pl.BlockSpec((Kp, Coutp), lambda i: (0, 0)),
        pl.BlockSpec((2, Coutp), lambda i: (0, 0)),
    ]
    args = [p, wp, sb]
    if has_residual:
        r = (jnp.zeros((Mp, Coutp), jnp.float32)
             .at[:M, :residual.shape[1]].set(residual.astype(jnp.float32)))
        in_specs.append(pl.BlockSpec((tile_m, Coutp), lambda i: (i, 0)))
        args.append(r)

    bytes_accessed = (Mp * Kp * 2 + Kp * Coutp * 2 + 2 * Coutp * 4
                      + (Mp * Coutp * 4 if has_residual else 0)
                      + Mp * Coutp * 4)

    out = pl.pallas_call(
        functools.partial(_conv_bn_act_kernel,
                          apply_relu=apply_relu, has_residual=has_residual),
        out_shape=jax.ShapeDtypeStruct((Mp, Coutp), jnp.float32),
        grid=(grid_m,),
        in_specs=in_specs,
        out_specs=pl.BlockSpec((tile_m, Coutp), lambda i: (i, 0)),
        compiler_params=pltpu.CompilerParams(
            dimension_semantics=("parallel",),      # megacore / 2-TC shard on v7x
            vmem_limit_bytes=32 * 1024 * 1024),     # explicit, safe on 64 MiB v7x
        cost_estimate=pl.CostEstimate(
            flops=2 * Mp * Kp * Coutp,
            transcendentals=0,
            bytes_accessed=bytes_accessed),
    )(*args)
    return out[:M]


def _avgpool_kernel(x_ref, o_ref):
    # x_ref: [N, H*W, Cp] -> mean over spatial (AdaptiveAvgPool2d((1,1)) + flatten)
    o_ref[...] = jnp.mean(x_ref[...], axis=1)


def global_avg_pool(x):
    # x is channel-padded to a multiple of 128, so the output is lane-dense.
    N, HW, Cp = x.shape
    return pl.pallas_call(
        _avgpool_kernel,
        out_shape=jax.ShapeDtypeStruct((N, Cp), jnp.float32),
        grid=(1,),
        in_specs=[pl.BlockSpec((N, HW, Cp), lambda i: (0, 0, 0))],
        out_specs=pl.BlockSpec((N, Cp), lambda i: (0, 0)),
    )(x)


# ------------------------------- JAX glue ---------------------------------- #
# TODO(synk): express the 3x3 convs as an in-kernel tap reduction (shifted
# index_maps + VMEM f32 accumulator) to remove the host-side im2col HBM
# materialization at real ResNet sizes; at these test shapes it is negligible.

def im2col(x_nhwc, kh, kw, stride, pad):
    N, H, W, C = x_nhwc.shape
    xp = jnp.pad(x_nhwc, ((0, 0), (pad, pad), (pad, pad), (0, 0)))
    Ho = (H + 2 * pad - kh) // stride + 1
    Wo = (W + 2 * pad - kw) // stride + 1
    cols = []
    for i in range(kh):
        for j in range(kw):
            cols.append(xp[:, i:i + stride * Ho:stride, j:j + stride * Wo:stride, :])
    p = jnp.stack(cols, axis=3)                        # [N, Ho, Wo, kh*kw, C]
    return p.reshape(N * Ho * Wo, kh * kw * C), Ho, Wo


def maxpool2d(x_nhwc, kh, kw, stride, pad):
    # Running maximum over the shifted views: no [kh*kw, M, C] materialization.
    N, H, W, C = x_nhwc.shape
    xp = jnp.pad(x_nhwc, ((0, 0), (pad, pad), (pad, pad), (0, 0)),
                 constant_values=-jnp.inf)
    Ho = (H + 2 * pad - kh) // stride + 1
    Wo = (W + 2 * pad - kw) // stride + 1
    out = None
    for i in range(kh):
        for j in range(kw):
            win = xp[:, i:i + stride * Ho:stride, j:j + stride * Wo:stride, :]
            out = win if out is None else jnp.maximum(out, win)
    return out, Ho, Wo


def conv_weight_to_matrix(w_oihw):
    # PyTorch conv weight [Cout, Cin, kh, kw] -> [kh*kw*Cin, Cout] (im2col order)
    return jnp.transpose(w_oihw, (2, 3, 1, 0)).reshape(-1, w_oihw.shape[0])


def fold_bn(gamma, beta, mean, var, eps=1e-5):
    scale = gamma / jnp.sqrt(var + eps)
    bias = beta - mean * scale
    return scale, bias


def init_params(key, cin=3, c1=8):
    ks = jax.random.split(key, 6)

    def bn(k, c):
        g = 1.0 + 0.1 * jax.random.normal(k, (c,), jnp.float32)
        b = 0.05 * jnp.ones((c,), jnp.float32)
        m = 0.02 * jnp.ones((c,), jnp.float32)
        v = 0.9 * jnp.ones((c,), jnp.float32)
        return g, b, m, v

    return {
        "conv1_w": 0.1 * jax.random.normal(ks[0], (c1, cin, 7, 7), jnp.float32),
        "bn1": bn(ks[1], c1),
        "b1_conv1_w": 0.1 * jax.random.normal(ks[2], (c1, c1, 3, 3), jnp.float32),
        "b1_bn1": bn(ks[3], c1),
        "b1_conv2_w": 0.1 * jax.random.normal(ks[4], (c1, c1, 3, 3), jnp.float32),
        "b1_bn2": bn(ks[5], c1),
    }


def resnet_bottom_forward(x_nchw, params):
    x = jnp.transpose(x_nchw, (0, 2, 3, 1)).astype(jnp.float32)   # NCHW -> NHWC
    N = x.shape[0]
    c1 = params["conv1_w"].shape[0]

    # conv1 (7x7, stride 2, pad 3) + BN + ReLU   (no residual — not materialized)
    patches, Ho, Wo = im2col(x, 7, 7, 2, 3)
    wmat = conv_weight_to_matrix(params["conv1_w"])
    scale, bias = fold_bn(*params["bn1"])
    y = conv_bn_act(patches, wmat, scale, bias, residual=None, apply_relu=True)
    y = y[:, :c1].reshape(N, Ho, Wo, c1)

    # maxpool (3x3, stride 2, pad 1) — running max in glue
    y, Ho, Wo = maxpool2d(y, 3, 3, 2, 1)

    # layer1: one BasicBlock (stride 1, identity shortcut)
    identity = y.reshape(N * Ho * Wo, c1)
    patches, Ho, Wo = im2col(y, 3, 3, 1, 1)
    w1 = conv_weight_to_matrix(params["b1_conv1_w"])
    s1, b1 = fold_bn(*params["b1_bn1"])
    z = conv_bn_act(patches, w1, s1, b1, residual=None, apply_relu=True)
    z = z[:, :c1].reshape(N, Ho, Wo, c1)

    patches2, _, _ = im2col(z, 3, 3, 1, 1)
    w2 = conv_weight_to_matrix(params["b1_conv2_w"])
    s2, b2 = fold_bn(*params["b1_bn2"])
    z = conv_bn_act(patches2, w2, s2, b2, residual=identity, apply_relu=True)
    # keep the channel-padded (lane-dense, 128) layout for the pooling kernel
    Cp = z.shape[1]
    z = z.reshape(N, Ho * Wo, Cp)

    # TODO(synk): torchvision ResNet-18 repeats layer2..layer4 with the same
    # fused kernel plus a 1x1 downsample conv on the shortcut; omitted for the
    # small synthetic model.

    pooled = global_avg_pool(z)          # AdaptiveAvgPool2d((1,1)) + flatten(1)
    return pooled[:, :c1]


if __name__ == "__main__":
    key = jax.random.PRNGKey(0)
    pkey, xkey = jax.random.split(key)
    params = init_params(pkey, cin=3, c1=8)
    x = jax.random.normal(xkey, (2, 3, 16, 16), jnp.float32)   # NCHW like PyTorch

    fwd = jax.jit(resnet_bottom_forward)
    out = jax.block_until_ready(fwd(x, params))
    assert out.shape == (2, 8), out.shape
    print("KERNEL_OK")
</pallas_src>

<mosaic_0001>
module attributes {stable_mosaic.version = 11 : i64} {
  func.func @_conv_bn_act_kernel(%arg0: i32, %arg1: memref<128x256xbf16, #tpu.memory_space<vmem>>, %arg2: memref<256x128xbf16, #tpu.memory_space<vmem>>, %arg3: memref<2x128xf32, #tpu.memory_space<vmem>>, %arg4: memref<128x128xf32, #tpu.memory_space<vmem>>) attributes {dimension_semantics = [#tpu.dimension_semantics<parallel>], iteration_bounds = array<i64: 1>, scalar_prefetch = 0 : i64, scratch_operands = 0 : i64, tpu.core_type = #tpu.core_type<tc>, window_params = [{transform_indices = @transform_0, window_bounds = array<i64: 128, 256>}, {pipeline_mode = #tpu.pipeline_mode<synchronous>, transform_indices = @transform_1, window_bounds = array<i64: 256, 128>}, {pipeline_mode = #tpu.pipeline_mode<synchronous>, transform_indices = @transform_2, window_bounds = array<i64: 2, 128>}, {transform_indices = @transform_3, window_bounds = array<i64: 128, 128>}]} {
    %c0 = arith.constant 0 : index
    %c0_0 = arith.constant 0 : index
    %0 = vector.load %arg1[%c0, %c0_0] : memref<128x256xbf16, #tpu.memory_space<vmem>>, vector<128x256xbf16>
    %c0_1 = arith.constant 0 : index
    %c0_2 = arith.constant 0 : index
    %1 = vector.load %arg2[%c0_1, %c0_2] : memref<256x128xbf16, #tpu.memory_space<vmem>>, vector<256x128xbf16>
    %cst = arith.constant dense<0.000000e+00> : vector<128x128xf32>
    %2 = tpu.matmul %0, %1, %cst {dimension_numbers = #tpu.dot_dimension_numbers<[1], [0], [0], [1], [0, 0, 1, 1], [], []>} : vector<128x256xbf16>, vector<256x128xbf16>, vector<128x128xf32> -> vector<128x128xf32>
    %c0_3 = arith.constant 0 : index
    %c0_4 = arith.constant 0 : index
    %3 = vector.load %arg3[%c0_3, %c0_4] : memref<2x128xf32, #tpu.memory_space<vmem>>, vector<2x128xf32>
    %4 = vector.extract_strided_slice %3 {offsets = [0, 0], sizes = [1, 128], strides = [1, 1]} : vector<2x128xf32> to vector<1x128xf32>
    %5 = vector.broadcast %4 : vector<1x128xf32> to vector<128x128xf32>
    %6 = arith.mulf %2, %5 : vector<128x128xf32>
    %7 = vector.extract_strided_slice %3 {offsets = [1, 0], sizes = [1, 128], strides = [1, 1]} : vector<2x128xf32> to vector<1x128xf32>
    %8 = vector.broadcast %7 : vector<1x128xf32> to vector<128x128xf32>
    %9 = arith.addf %6, %8 : vector<128x128xf32>
    %cst_5 = arith.constant 0.000000e+00 : f32
    %10 = vector.broadcast %cst_5 : f32 to vector<128x128xf32>
    %11 = arith.maximumf %9, %10 : vector<128x128xf32>
    %c0_6 = arith.constant 0 : index
    %c0_7 = arith.constant 0 : index
    %12 = vector.load %arg4[%c0_6, %c0_7] : memref<128x128xf32, #tpu.memory_space<vmem>>, vector<128x128xf32>
    tpu.vector_store %arg4[%c0_6, %c0_7], %11 {strides = array<i32>} : memref<128x128xf32, #tpu.memory_space<vmem>>, vector<128x128xf32>,
    return
  }
  func.func @transform_0(%arg0: i32) -> (i32, i32) {
    %c0_i32 = arith.constant 0 : i32
    %c0_i32_0 = arith.constant 0 : i32
    return %arg0, %c0_i32 : i32, i32
  }
  func.func @transform_1(%arg0: i32) -> (i32, i32) {
    %c0_i32 = arith.constant 0 : i32
    %c0_i32_0 = arith.constant 0 : i32
    %c0_i32_1 = arith.constant 0 : i32
    return %c0_i32, %c0_i32_0 : i32, i32
  }
  func.func @transform_2(%arg0: i32) -> (i32, i32) {
    %c0_i32 = arith.constant 0 : i32
    %c0_i32_0 = arith.constant 0 : i32
    %c0_i32_1 = arith.constant 0 : i32
    return %c0_i32, %c0_i32_0 : i32, i32
  }
  func.func @transform_3(%arg0: i32) -> (i32, i32) {
    %c0_i32 = arith.constant 0 : i32
    %c0_i32_0 = arith.constant 0 : i32
    return %arg0, %c0_i32 : i32, i32
  }
}

module attributes {stable_mosaic.version = 11 : i64} {
  func.func @_avgpool_kernel(%arg0: i32, %arg1: memref<2x16x128xf32, #tpu.memory_space<vmem>>, %arg2: memref<2x128xf32, #tpu.memory_space<vmem>>) attributes {dimension_semantics = [#tpu.dimension_semantics<arbitrary>], iteration_bounds = array<i64: 1>, scalar_prefetch = 0 : i64, scratch_operands = 0 : i64, tpu.core_type = #tpu.core_type<tc>, window_params = [{pipeline_mode = #tpu.pipeline_mode<synchronous>, transform_indices = @transform_0, window_bounds = array<i64: 2, 16, 128>}, {pipeline_mode = #tpu.pipeline_mode<synchronous>, transform_indices = @transform_1, window_bounds = array<i64: 2, 128>}]} {
    %c0 = arith.constant 0 : index
    %c0_0 = arith.constant 0 : index
    %c0_1 = arith.constant 0 : index
    %0 = vector.load %arg1[%c0, %c0_0, %c0_1] : memref<2x16x128xf32, #tpu.memory_space<vmem>>, vector<2x16x128xf32>
    %cst = arith.constant dense<0.000000e+00> : vector<2x128xf32>
    %1 = vector.multi_reduction <add>, %0, %cst [1] : vector<2x16x128xf32> to vector<2x128xf32>
    %cst_2 = arith.constant 1.600000e+01 : f32
    %2 = vector.broadcast %cst_2 : f32 to vector<2x128xf32>
    %3 = arith.divf %1, %2 : vector<2x128xf32>
    %c0_3 = arith.constant 0 : index
    %c0_4 = arith.constant 0 : index
    %4 = vector.load %arg2[%c0_3, %c0_4] : memref<2x128xf32, #tpu.memory_space<vmem>>, vector<2x128xf32>
    tpu.vector_store %arg2[%c0_3, %c0_4], %3 {strides = array<i32>} : memref<2x128xf32, #tpu.memory_space<vmem>>, vector<2x128xf32>,
    return
  }
  func.func @transform_0(%arg0: i32) -> (i32, i32, i32) {
    %c0_i32 = arith.constant 0 : i32
    %c0_i32_0 = arith.constant 0 : i32
    %c0_i32_1 = arith.constant 0 : i32
    %c0_i32_2 = arith.constant 0 : i32
    return %c0_i32, %c0_i32_0, %c0_i32_1 : i32, i32, i32
  }
  func.func @transform_1(%arg0: i32) -> (i32, i32) {
    %c0_i32 = arith.constant 0 : i32
    %c0_i32_0 = arith.constant 0 : i32
    %c0_i32_1 = arith.constant 0 : i32
    return %c0_i32, %c0_i32_0 : i32, i32
  }
}

module attributes {stable_mosaic.version = 11 : i64} {
  func.func @_conv_bn_act_kernel(%arg0: i32, %arg1: memref<32x128xbf16, #tpu.memory_space<vmem>>, %arg2: memref<128x128xbf16, #tpu.memory_space<vmem>>, %arg3: memref<2x128xf32, #tpu.memory_space<vmem>>, %arg4: memref<32x128xf32, #tpu.memory_space<vmem>>) attributes {dimension_semantics = [#tpu.dimension_semantics<parallel>], iteration_bounds = array<i64: 1>, scalar_prefetch = 0 : i64, scratch_operands = 0 : i64, tpu.core_type = #tpu.core_type<tc>, window_params = [{transform_indices = @transform_0, window_bounds = array<i64: 32, 128>}, {pipeline_mode = #tpu.pipeline_mode<synchronous>, transform_indices = @transform_1, window_bounds = array<i64: 128, 128>}, {pipeline_mode = #tpu.pipeline_mode<synchronous>, transform_indices = @transform_2, window_bounds = array<i64: 2, 128>}, {transform_indices = @transform_3, window_bounds = array<i64: 32, 128>}]} {
    %c0 = arith.constant 0 : index
    %c0_0 = arith.constant 0 : index
    %0 = vector.load %arg1[%c0, %c0_0] : memref<32x128xbf16, #tpu.memory_space<vmem>>, vector<32x128xbf16>
    %c0_1 = arith.constant 0 : index
    %c0_2 = arith.constant 0 : index
    %1 = vector.load %arg2[%c0_1, %c0_2] : memref<128x128xbf16, #tpu.memory_space<vmem>>, vector<128x128xbf16>
    %cst = arith.constant dense<0.000000e+00> : vector<32x128xf32>
    %2 = tpu.matmul %0, %1, %cst {dimension_numbers = #tpu.dot_dimension_numbers<[1], [0], [0], [1], [0, 0, 1, 1], [], []>} : vector<32x128xbf16>, vector<128x128xbf16>, vector<32x128xf32> -> vector<32x128xf32>
    %c0_3 = arith.constant 0 : index
    %c0_4 = arith.constant 0 : index
    %3 = vector.load %arg3[%c0_3, %c0_4] : memref<2x128xf32, #tpu.memory_space<vmem>>, vector<2x128xf32>
    %4 = vector.extract_strided_slice %3 {offsets = [0, 0], sizes = [1, 128], strides = [1, 1]} : vector<2x128xf32> to vector<1x128xf32>
    %5 = vector.broadcast %4 : vector<1x128xf32> to vector<32x128xf32>
    %6 = arith.mulf %2, %5 : vector<32x128xf32>
    %7 = vector.extract_strided_slice %3 {offsets = [1, 0], sizes = [1, 128], strides = [1, 1]} : vector<2x128xf32> to vector<1x128xf32>
    %8 = vector.broadcast %7 : vector<1x128xf32> to vector<32x128xf32>
    %9 = arith.addf %6, %8 : vector<32x128xf32>
    %cst_5 = arith.constant 0.000000e+00 : f32
    %10 = vector.broadcast %cst_5 : f32 to vector<32x128xf32>
    %11 = arith.maximumf %9, %10 : vector<32x128xf32>
    %c0_6 = arith.constant 0 : index
    %c0_7 = arith.constant 0 : index
    %12 = vector.load %arg4[%c0_6, %c0_7] : memref<32x128xf32, #tpu.memory_space<vmem>>, vector<32x128xf32>
    tpu.vector_store %arg4[%c0_6, %c0_7], %11 {strides = array<i32>} : memref<32x128xf32, #tpu.memory_space<vmem>>, vector<32x128xf32>,
    return
  }
  func.func @transform_0(%arg0: i32) -> (i32, i32) {
    %c0_i32 = arith.constant 0 : i32
    %c0_i32_0 = arith.constant 0 : i32
    return %arg0, %c0_i32 : i32, i32
  }
  func.func @transform_1(%arg0: i32) -> (i32, i32) {
    %c0_i32 = arith.constant 0 : i32
    %c0_i32_0 = arith.constant 0 : i32
    %c0_i32_1 = arith.constant 0 : i32
    return %c0_i32, %c0_i32_0 : i32, i32
  }
  func.func @transform_2(%arg0: i32) -> (i32, i32) {
    %c0_i32 = arith.constant 0 : i32
    %c0_i32_0 = arith.constant 0 : i32
    %c0_i32_1 = arith.constant 0 : i32
    return %c0_i32, %c0_i32_0 : i32, i32
  }
  func.func @transform_3(%arg0: i32) -> (i32, i32) {
    %c0_i32 = arith.constant 0 : i32
    %c0_i32_0 = arith.constant 0 : i32
    return %arg0, %c0_i32 : i32, i32
  }
}

module attributes {stable_mosaic.version = 11 : i64} {
  func.func @_conv_bn_act_kernel(%arg0: i32, %arg1: memref<32x128xbf16, #tpu.memory_space<vmem>>, %arg2: memref<128x128xbf16, #tpu.memory_space<vmem>>, %arg3: memref<2x128xf32, #tpu.memory_space<vmem>>, %arg4: memref<32x128xf32, #tpu.memory_space<vmem>>, %arg5: memref<32x128xf32, #tpu.memory_space<vmem>>) attributes {dimension_semantics = [#tpu.dimension_semantics<parallel>], iteration_bounds = array<i64: 1>, scalar_prefetch = 0 : i64, scratch_operands = 0 : i64, tpu.core_type = #tpu.core_type<tc>, window_params = [{transform_indices = @transform_0, window_bounds = array<i64: 32, 128>}, {pipeline_mode = #tpu.pipeline_mode<synchronous>, transform_indices = @transform_1, window_bounds = array<i64: 128, 128>}, {pipeline_mode = #tpu.pipeline_mode<synchronous>, transform_indices = @transform_2, window_bounds = array<i64: 2, 128>}, {transform_indices = @transform_3, window_bounds = array<i64: 32, 128>}, {transform_indices = @transform_4, window_bounds = array<i64: 32, 128>}]} {
    %c0 = arith.constant 0 : index
    %c0_0 = arith.constant 0 : index
    %0 = vector.load %arg1[%c0, %c0_0] : memref<32x128xbf16, #tpu.memory_space<vmem>>, vector<32x128xbf16>
    %c0_1 = arith.constant 0 : index
    %c0_2 = arith.constant 0 : index
    %1 = vector.load %arg2[%c0_1, %c0_2] : memref<128x128xbf16, #tpu.memory_space<vmem>>, vector<128x128xbf16>
    %cst = arith.constant dense<0.000000e+00> : vector<32x128xf32>
    %2 = tpu.matmul %0, %1, %cst {dimension_numbers = #tpu.dot_dimension_numbers<[1], [0], [0], [1], [0, 0, 1, 1], [], []>} : vector<32x128xbf16>, vector<128x128xbf16>, vector<32x128xf32> -> vector<32x128xf32>
    %c0_3 = arith.constant 0 : index
    %c0_4 = arith.constant 0 : index
    %3 = vector.load %arg3[%c0_3, %c0_4] : memref<2x128xf32, #tpu.memory_space<vmem>>, vector<2x128xf32>
    %4 = vector.extract_strided_slice %3 {offsets = [0, 0], sizes = [1, 128], strides = [1, 1]} : vector<2x128xf32> to vector<1x128xf32>
    %5 = vector.broadcast %4 : vector<1x128xf32> to vector<32x128xf32>
    %6 = arith.mulf %2, %5 : vector<32x128xf32>
    %7 = vector.extract_strided_slice %3 {offsets = [1, 0], sizes = [1, 128], strides = [1, 1]} : vector<2x128xf32> to vector<1x128xf32>
    %8 = vector.broadcast %7 : vector<1x128xf32> to vector<32x128xf32>
    %9 = arith.addf %6, %8 : vector<32x128xf32>
    %c0_5 = arith.constant 0 : index
    %c0_6 = arith.constant 0 : index
    %10 = vector.load %arg4[%c0_5, %c0_6] : memref<32x128xf32, #tpu.memory_space<vmem>>, vector<32x128xf32>
    %11 = arith.addf %9, %10 : vector<32x128xf32>
    %cst_7 = arith.constant 0.000000e+00 : f32
    %12 = vector.broadcast %cst_7 : f32 to vector<32x128xf32>
    %13 = arith.maximumf %11, %12 : vector<32x128xf32>
    %c0_8 = arith.constant 0 : index
    %c0_9 = arith.constant 0 : index
    %14 = vector.load %arg5[%c0_8, %c0_9] : memref<32x128xf32, #tpu.memory_space<vmem>>, vector<32x128xf32>
    tpu.vector_store %arg5[%c0_8, %c0_9], %13 {strides = array<i32>} : memref<32x128xf32, #tpu.memory_space<vmem>>, vector<32x128xf32>,
    return
  }
  func.func @transform_0(%arg0: i32) -> (i32, i32) {
    %c0_i32 = arith.constant 0 : i32
    %c0_i32_0 = arith.constant 0 : i32
    return %arg0, %c0_i32 : i32, i32
  }
  func.func @transform_1(%arg0: i32) -> (i32, i32) {
    %c0_i32 = arith.constant 0 : i32
    %c0_i32_0 = arith.constant 0 : i32
    %c0_i32_1 = arith.constant 0 : i32
    return %c0_i32, %c0_i32_0 : i32, i32
  }
  func.func @transform_2(%arg0: i32) -> (i32, i32) {
    %c0_i32 = arith.constant 0 : i32
    %c0_i32_0 = arith.constant 0 : i32
    %c0_i32_1 = arith.constant 0 : i32
    return %c0_i32, %c0_i32_0 : i32, i32
  }
  func.func @transform_3(%arg0: i32) -> (i32, i32) {
    %c0_i32 = arith.constant 0 : i32
    %c0_i32_0 = arith.constant 0 : i32
    return %arg0, %c0_i32 : i32, i32
  }
  func.func @transform_4(%arg0: i32) -> (i32, i32) {
    %c0_i32 = arith.constant 0 : i32
    %c0_i32_0 = arith.constant 0 : i32
    return %arg0, %c0_i32 : i32, i32
  }
}

</mosaic_0001>

<bundles_post_ra>
// kernel: resnet_bottom_forward.4
= control target key start
LH: loop header
LB: loop body
LE: loop exit
PB: predicated region body
PF: predicated region fallthrough
CT: control target
= control target key end

     0   :  { %v337_v32 = vlaneseq  ;;  %s768_s1 = inlined_call_operand.vmem [shape: bf16[256,128], index: 1, kind: input, shape index: {}]   ;;  %s769_s0 = inlined_call_operand.vmem [shape: bf16[128,256], index: 0, kind: input, shape index: {}]   ;;  %s770_s2 = inlined_call_operand.vmem [shape: f32[2,128], index: 2, kind: input, shape index: {}]   ;;  %s771_s3 = inlined_call_operand.vmem [shape: f32[128,128], index: 3, kind: output, shape index: {}]  }
   0x1   :  { %v525_v0 = vld [vmem:[%s768_s1 + $0x78] sm:$0xff]   ;;  %v527_v2 = vld [vmem:[%s768_s1 + $0x70] sm:$0xff]   ;;  %v529_v4 = vld [vmem:[%s768_s1 + $0x68] sm:$0xff]  }
   0x2   :  { %v526_v1 = vld [vmem:[%s768_s1 + $0x38] sm:$0xff]   ;;  %445 = vmatprep.subr.bf16.mxu0 %v525_v0  ;;  %509 = vmatprep.subr.bf16.mxu1 %v525_v0  ;;  %v528_v3 = vld [vmem:[%s768_s1 + $0x30] sm:$0xff]   ;;  %v530_v5 = vld [vmem:[%s768_s1 + $0x28] sm:$0xff]   ;;  %v338_v33 = vshrl.u32 %v337_v32, 7 }
   0x3   :  { %446 = vmatpush3.bf16.msra.mxu0 %v526_v1  ;;  %517 = vmatpush3.bf16.msra.mxu1 %v526_v1  ;;  %v531_v6 = vld [vmem:[%s768_s1 + $0x60] sm:$0xff]   ;;  %v533_v8 = vld [vmem:[%s768_s1 + $0x58] sm:$0xff]   ;;  %v535_v10 = vld [vmem:[%s768_s1 + $0x50] sm:$0xff]  }
   0x4   :  { %447 = vmatprep.subr.bf16.mxu0 %v527_v2  ;;  %510 = vmatprep.subr.bf16.mxu1 %v527_v2  ;;  %v532_v7 = vld [vmem:[%s768_s1 + $0x20] sm:$0xff]   ;;  %v534_v9 = vld [vmem:[%s768_s1 + $0x18] sm:$0xff]   ;;  %v536_v13 = vld [vmem:[%s768_s1 + $0x10] sm:$0xff]   ;;  %v339_v34 = vsub.s32 0, %v338_v33  ;;  %v359_v36 = vsub.s32 1, %v338_v33 }
   0x5   :  { %v543_v11 = vld [vmem:[%s769_s0 + $0x4] ss:$8 sps:$4 sm:$0xff]   ;;  %v541_v18 = vld [vmem:[%s769_s0] ss:$8 sps:$4 sm:$0xff]   ;;  %v547_v20 = vld [vmem:[%s769_s0 + $0x14] ss:$8 sps:$4 sm:$0xff]  }
   0x6   :  { %v546_v12 = vld [vmem:[%s769_s0 + $0x44] ss:$8 sps:$4 sm:$0xff]   ;;  %271 = vmatprep.mubr.bf16.mxu0 %v543_v11  ;;  %v544_v19 = vld [vmem:[%s769_s0 + $0x40] ss:$8 sps:$4 sm:$0xff]   ;;  %v549_v21 = vld [vmem:[%s769_s0 + $0x54] ss:$8 sps:$4 sm:$0xff]  }
   0x7   :  { %448 = vmatpush3.bf16.msra.mxu0 %v528_v3  ;;  %518 = vmatpush3.bf16.msra.mxu1 %v528_v3  ;;  %v537_v14 = vld [vmem:[%s768_s1 + $0x48] sm:$0xff]   ;;  %v539_v16 = vld [vmem:[%s768_s1 + $0x40] sm:$0xff]   ;;  %v551_v22 = vld [vmem:[%s769_s0 + $0x10] ss:$8 sps:$4 sm:$0xff]  }
   0x8   :  { %449 = vmatprep.subr.bf16.mxu0 %v529_v4  ;;  %511 = vmatprep.subr.bf16.mxu1 %v529_v4  ;;  %v538_v15 = vld [vmem:[%s768_s1 + $0x8] sm:$0xff]   ;;  %v540_v17 = vld [vmem:[%s768_s1] sm:$0xff]   ;;  %v552_v23 = vld [vmem:[%s769_s0 + $0x50] ss:$8 sps:$4 sm:$0xff]  }
   0x9   :  { %303 = vmatprep.mubr.bf16.mxu1 %v546_v12  ;;  %v553_v24 = vld [vmem:[%s769_s0 + $0x24] ss:$8 sps:$4 sm:$0xff]   ;;  %v557_v26 = vld [vmem:[%s769_s0 + $0x20] ss:$8 sps:$4 sm:$0xff]   ;;  %v559_v28 = vld [vmem:[%s769_s0 + $0x34] ss:$8 sps:$4 sm:$0xff]  }
   0xa   :  { %v555_v25 = vld [vmem:[%s769_s0 + $0x64] ss:$8 sps:$4 sm:$0xff]   ;;  %v558_v27 = vld [vmem:[%s769_s0 + $0x60] ss:$8 sps:$4 sm:$0xff]   ;;  %v561_v29 = vld [vmem:[%s769_s0 + $0x74] ss:$8 sps:$4 sm:$0xff]  }
   0xb   :  { %450 = vmatpush3.bf16.msra.mxu0 %v530_v5  ;;  %519 = vmatpush3.bf16.msra.mxu1 %v530_v5  ;;  %v563_v30 = vld [vmem:[%s769_s0 + $0x30] ss:$8 sps:$4 sm:$0xff]   ;;  %v336_v35 = vld [vmem:[%s770_s2] sm:$0x3] }
   0xc   :  { %451 = vmatprep.subr.bf16.mxu0 %v531_v6  ;;  %512 = vmatprep.subr.bf16.mxu1 %v531_v6  ;;  %v564_v31 = vld [vmem:[%s769_s0 + $0x70] ss:$8 sps:$4 sm:$0xff]   ;;  %v684_v39 = vrot.slane %v336_v35, %v339_v34  ;;  %v686_v43 = vrot.slane %v336_v35, %v359_v36 }
   0xf   :  { %452 = vmatpush3.bf16.msra.mxu0 %v532_v7  ;;  %520 = vmatpush3.bf16.msra.mxu1 %v532_v7 }
  0x10   :  { %453 = vmatprep.subr.bf16.mxu0 %v533_v8  ;;  %513 = vmatprep.subr.bf16.mxu1 %v533_v8 }
  0x13   :  { %454 = vmatpush3.bf16.msra.mxu0 %v534_v9  ;;  %521 = vmatpush3.bf16.msra.mxu1 %v534_v9 }
  0x14   :  { %455 = vmatprep.subr.bf16.mxu0 %v535_v10  ;;  %514 = vmatprep.subr.bf16.mxu1 %v535_v10 }
  0x17   :  { %456 = vmatpush3.bf16.msra.mxu0 %v536_v13  ;;  %522 = vmatpush3.bf16.msra.mxu1 %v536_v13 }
  0x18   :  { %457 = vmatprep.subr.bf16.mxu0 %v537_v14  ;;  %515 = vmatprep.subr.bf16.mxu1 %v537_v14 }
  0x1b   :  { %458 = vmatpush3.bf16.msra.mxu0 %v538_v15  ;;  %523 = vmatpush3.bf16.msra.mxu1 %v538_v15 }
  0x1c   :  { %459 = vmatprep.subr.bf16.mxu0 %v539_v16  ;;  %516 = vmatprep.subr.bf16.mxu1 %v539_v16 }
  0x1f   :  { %460 = vmatpush3.bf16.msra.mxu0 %v540_v17  ;;  %524 = vmatpush3.bf16.msra.mxu1 %v540_v17 }
  0x22   :  { %272 = vmatmul.mubr.bf16.vlgmr.msra.gmra.mxu0 %v541_v18  ;;  %304 = vmatmul.mubr.bf16.vlgmr.msra.gmra.mxu1 %v544_v19 }
  0x23   :  { %279 = vmatprep.mubr.bf16.mxu0 %v547_v20  ;;  %311 = vmatprep.mubr.bf16.mxu1 %v549_v21 }
  0x2a   :  { %280 = vmatmul.mubr.bf16.gmra.mxu0 %v551_v22  ;;  %312 = vmatmul.mubr.bf16.gmra.mxu1 %v552_v23 }
  0x2b   :  { %287 = vmatprep.mubr.bf16.mxu0 %v553_v24  ;;  %319 = vmatprep.mubr.bf16.mxu1 %v555_v25 }
  0x32   :  { %288 = vmatmul.mubr.bf16.gmra.mxu0 %v557_v26  ;;  %320 = vmatmul.mubr.bf16.gmra.mxu1 %v558_v27 }
  0x33   :  { %295 = vmatprep.mubr.bf16.mxu0 %v559_v28  ;;  %327 = vmatprep.mubr.bf16.mxu1 %v561_v29 }
  0x3a   :  { %296 = vmatmul.mubr.bf16.gmra.mxu0 %v563_v30  ;;  %328 = vmatmul.mubr.bf16.gmra.mxu1 %v564_v31 }
  0xe2   :  { %v461_v37 = vpop.f32.mrf.mxu0  ;;  %v485_v38 = vpop.f32.mrf.mxu1 }
  0xe4   :  { %v462_v40 = vpop.f32.mrf.mxu0  ;;  %v486_v41 = vpop.f32.mrf.mxu1 }
  0xe5   :  { %v463_v42 = vadd.f32 %v462_v40, %v461_v37  ;;  %v487_v44 = vadd.f32 %v486_v41, %v485_v38 }
  0xe6   :  { %v464_v45 = vpop.f32.mrf.mxu0  ;;  %v488_v46 = vpop.f32.mrf.mxu1 }
  0xe7   :  { %v341_v47 = vmul.f32 %v463_v42, %v684_v39  ;;  %v349_v48 = vmul.f32 %v487_v44, %v684_v39 }
  0xe8   :  { %v465_v49 = vpop.f32.mrf.mxu0  ;;  %v489_v50 = vpop.f32.mrf.mxu1 }
  0xe9   :  { %v361_v51 = vadd.f32 %v686_v43, %v341_v47  ;;  %v369_v52 = vadd.f32 %v686_v43, %v349_v48  ;;  %v466_v53 = vadd.f32 %v465_v49, %v464_v45  ;;  %v490_v54 = vadd.f32 %v489_v50, %v488_v46 }
  0xea   :  { %v467_v55 = vpop.f32.mrf.mxu0  ;;  %v491_v56 = vpop.f32.mrf.mxu1 }
  0xeb   :  { %v377_v57 = vmax.f32 %v361_v51, 0.0  ;;  %v385_v58 = vmax.f32 %v369_v52, 0.0  ;;  %v342_v59 = vmul.f32 %v466_v53, %v684_v39  ;;  %v350_v60 = vmul.f32 %v490_v54, %v684_v39 }
  0xec   :  { %v468_v61 = vpop.f32.mrf.mxu0  ;;  %v492_v62 = vpop.f32.mrf.mxu1 }
  0xed   :  { %393 = vst [vmem:[%s771_s3] sm:$0xff] %v377_v57  ;;  %401 = vst [vmem:[%s771_s3 + $0x40] sm:$0xff] %v385_v58  ;;  %v362_v63 = vadd.f32 %v686_v43, %v342_v59  ;;  %v370_v0 = vadd.f32 %v686_v43, %v350_v60  ;;  %v469_v1 = vadd.f32 %v468_v61, %v467_v55 }
  0xee   :  { %v493_v2 = vadd.f32 %v492_v62, %v491_v56  ;;  %v470_v3 = vpop.f32.mrf.mxu0  ;;  %v494_v4 = vpop.f32.mrf.mxu1 }
  0xef   :  { %v378_v5 = vmax.f32 %v362_v63, 0.0  ;;  %v386_v6 = vmax.f32 %v370_v0, 0.0  ;;  %v343_v7 = vmul.f32 %v469_v1, %v684_v39 }
  0xf0   :  { %v351_v8 = vmul.f32 %v493_v2, %v684_v39  ;;  %v471_v9 = vpop.f32.mrf.mxu0  ;;  %v495_v10 = vpop.f32.mrf.mxu1 }
  0xf1   :  { %394 = vst [vmem:[%s771_s3 + $0x8] sm:$0xff] %v378_v5  ;;  %402 = vst [vmem:[%s771_s3 + $0x48] sm:$0xff] %v386_v6  ;;  %v363_v11 = vadd.f32 %v686_v43, %v343_v7  ;;  %v472_v13 = vadd.f32 %v471_v9, %v470_v3  ;;  %v496_v14 = vadd.f32 %v495_v10, %v494_v4 }
  0xf2   :  { %v371_v12 = vadd.f32 %v686_v43, %v351_v8  ;;  %v473_v15 = vpop.f32.mrf.mxu0  ;;  %v497_v16 = vpop.f32.mrf.mxu1 }
  0xf3   :  { %v379_v17 = vmax.f32 %v363_v11, 0.0  ;;  %v344_v19 = vmul.f32 %v472_v13, %v684_v39  ;;  %v352_v20 = vmul.f32 %v496_v14, %v684_v39 }
  0xf4   :  { %v387_v18 = vmax.f32 %v371_v12, 0.0  ;;  %v474_v21 = vpop.f32.mrf.mxu0  ;;  %v498_v22 = vpop.f32.mrf.mxu1 }
  0xf5   :  { %395 = vst [vmem:[%s771_s3 + $0x10] sm:$0xff] %v379_v17  ;;  %v364_v23 = vadd.f32 %v686_v43, %v344_v19  ;;  %v372_v24 = vadd.f32 %v686_v43, %v352_v20  ;;  %v475_v25 = vadd.f32 %v474_v21, %v473_v15  ;;  %v499_v26 = vadd.f32 %v498_v22, %v497_v16 }
  0xf6   :  { %403 = vst [vmem:[%s771_s3 + $0x50] sm:$0xff] %v387_v18  ;;  %v476_v27 = vpop.f32.mrf.mxu0  ;;  %v500_v28 = vpop.f32.mrf.mxu1 }
  0xf7   :  { %v380_v29 = vmax.f32 %v364_v23, 0.0  ;;  %v388_v30 = vmax.f32 %v372_v24, 0.0  ;;  %v345_v31 = vmul.f32 %v475_v25, %v684_v39  ;;  %v353_v32 = vmul.f32 %v499_v26, %v684_v39 }
  0xf8   :  { %v477_v33 = vpop.f32.mrf.mxu0  ;;  %v501_v34 = vpop.f32.mrf.mxu1 }
  0xf9   :  { %396 = vst [vmem:[%s771_s3 + $0x18] sm:$0xff] %v380_v29  ;;  %404 = vst [vmem:[%s771_s3 + $0x58] sm:$0xff] %v388_v30  ;;  %v365_v35 = vadd.f32 %v686_v43, %v345_v31  ;;  %v373_v36 = vadd.f32 %v686_v43, %v353_v32  ;;  %v478_v37 = vadd.f32 %v477_v33, %v476_v27 }
  0xfa   :  { %v502_v38 = vadd.f32 %v501_v34, %v500_v28  ;;  %v479_v40 = vpop.f32.mrf.mxu0  ;;  %v503_v41 = vpop.f32.mrf.mxu1 }
  0xfb   :  { %v381_v42 = vmax.f32 %v365_v35, 0.0  ;;  %v389_v44 = vmax.f32 %v373_v36, 0.0  ;;  %v346_v45 = vmul.f32 %v478_v37, %v684_v39 }
  0xfc   :  { %v354_v46 = vmul.f32 %v502_v38, %v684_v39  ;;  %v480_v47 = vpop.f32.mrf.mxu0  ;;  %v504_v48 = vpop.f32.mrf.mxu1 }
  0xfd   :  { %397 = vst [vmem:[%s771_s3 + $0x20] sm:$0xff] %v381_v42  ;;  %405 = vst [vmem:[%s771_s3 + $0x60] sm:$0xff] %v389_v44  ;;  %v366_v49 = vadd.f32 %v686_v43, %v346_v45  ;;  %v481_v51 = vadd.f32 %v480_v47, %v479_v40  ;;  %v505_v52 = vadd.f32 %v504_v48, %v503_v41 }
  0xfe   :  { %v374_v50 = vadd.f32 %v686_v43, %v354_v46  ;;  %v482_v53 = vpop.f32.mrf.mxu0  ;;  %v506_v54 = vpop.f32.mrf.mxu1 }
  0xff   :  { %v382_v55 = vmax.f32 %v366_v49, 0.0  ;;  %v347_v57 = vmul.f32 %v481_v51, %v684_v39  ;;  %v355_v58 = vmul.f32 %v505_v52, %v684_v39 }
 0x100   :  { %v390_v56 = vmax.f32 %v374_v50, 0.0  ;;  %v483_v59 = vpop.f32.mrf.mxu0  ;;  %v507_v60 = vpop.f32.mrf.mxu1 }
 0x101   :  { %398 = vst [vmem:[%s771_s3 + $0x28] sm:$0xff] %v382_v55  ;;  %v367_v61 = vadd.f32 %v686_v43, %v347_v57  ;;  %v375_v62 = vadd.f32 %v686_v43, %v355_v58  ;;  %v484_v63 = vadd.f32 %v483_v59, %v482_v53  ;;  %v508_v0 = vadd.f32 %v507_v60, %v506_v54 }
 0x102   :  { %406 = vst [vmem:[%s771_s3 + $0x68] sm:$0xff] %v390_v56 }
 0x103   :  { %v383_v1 = vmax.f32 %v367_v61, 0.0  ;;  %v391_v2 = vmax.f32 %v375_v62, 0.0  ;;  %v348_v3 = vmul.f32 %v484_v63, %v684_v39  ;;  %v356_v4 = vmul.f32 %v508_v0, %v684_v39 }
 0x105   :  { %399 = vst [vmem:[%s771_s3 + $0x30] sm:$0xff] %v383_v1  ;;  %407 = vst [vmem:[%s771_s3 + $0x70] sm:$0xff] %v391_v2  ;;  %v368_v5 = vadd.f32 %v686_v43, %v348_v3  ;;  %v376_v6 = vadd.f32 %v686_v43, %v356_v4 }
 0x107   :  { %v384_v7 = vmax.f32 %v368_v5, 0.0  ;;  %v392_v8 = vmax.f32 %v376_v6, 0.0 }
 0x109   :  { %400 = vst [vmem:[%s771_s3 + $0x38] sm:$0xff] %v384_v7  ;;  %408 = vst [vmem:[%s771_s3 + $0x78] sm:$0xff] %v392_v8 }

// kernel: resnet_bottom_forward.7
= control target key start
LH: loop header
LB: loop body
LE: loop exit
PB: predicated region body
PF: predicated region fallthrough
CT: control target
= control target key end

     0   :  { %s99_s0 = inlined_call_operand.vmem [shape: f32[2,16,128], index: 0, kind: input, shape index: {}]   ;;  %s100_s1 = inlined_call_operand.hbm [shape: f32[2,128], index: 1, kind: output, shape index: {}]  }
   0x1   :  { %v9_v0 = vld [vmem:[%s99_s0] sm:$0xff]  ;;  %v10_v1 = vld [vmem:[%s99_s0 + $0x8] sm:$0xff]  ;;  %v11_v2 = vld [vmem:[%s99_s0 + $0x10] sm:$0xff] }
   0x2   :  { %v12_v3 = vld [vmem:[%s99_s0 + $0x18] sm:$0xff]  ;;  %v13_v4 = vadd.f32 %v10_v1, %v9_v0 }
   0x3   :  { %6 = vsyncpa [#allocation3], 0  ;;  %v20_v5 = vadd.f32 %v12_v3, %v11_v2  ;;  %s73_s14 = smov [#allocation2]   ;;  %vm32_vm0 = vcmask 1041409  }
   0x4   :  { %v14_v6 = vrot.slane %v13_v4, 4  ;;  %s42_s15 = sshll.u32 %s73_s14, 4  ;;  %s43_s15 = int_to_ptr.vmem [resolvable:$true] %s42_s15 }
   0x5   :  { %v21_v7 = vrot.slane %v20_v5, 4  ;;  %s51_s0 = scalar_lea.vmem %s43_s15, 32  ;;  %p56_p1 = scmp.lt.s32.totalorder %s43_s15, %s43_s15 }
   0x6   :  { %v15_v8 = vadd.f32 %v14_v6, %v13_v4  ;;  %p52_p0 = scmp.ne.s32.totalorder %s43_s15, %s51_s0  ;;  %p57_p2 = scmp.lt.s32.totalorder %s51_s0, %s51_s0 }
   0x7   :  { %v22_v9 = vadd.f32 %v21_v7, %v20_v5 }
   0x8   :  { %v16_v10 = vrot.slane %v15_v8, 2  ;;  %p58_p3 = por %p57_p2, %p56_p1 }
   0x9   :  { %v23_v11 = vrot.slane %v22_v9, 2 }
   0xa   :  { %v17_v12 = vadd.f32 %v16_v10, %v15_v8  ;;  %p59_p4 = pnand %p58_p3, %p52_p0 }
   0xb   :  { %v24_v13 = vadd.f32 %v23_v11, %v22_v9 }
   0xc   :  { %v18_v14 = vrot.slane %v17_v12, 1 }
   0xd   :  { %v25_v15 = vrot.slane %v24_v13, 1 }
   0xe   :  { %v19_v16 = vadd.f32 %v18_v14, %v17_v12 }
   0xf   :  { %v26_v17 = vadd.f32 %v25_v15, %v24_v13 }
  0x10   :  { %v28_v18 = vmul.f32 0.0625, %v19_v16 }
  0x11   :  { %v29_v19 = vmul.f32 0.0625, %v26_v17 }
  0x13   :  { %v33_v20 = vsel %vm32_vm0, %v29_v19, %v28_v18 }
  0x14   :  { %35 = vst [vmem:[#allocation2] sm:$0x3] %v33_v20 }
  0x15   :  { %62 = shalt.err (!%p59_p4)
}
  0x16   :  { %45 = dma.vmem_to_hbm [thread:$0]  %s43_s15, 32, %s100_s1, [#allocation3]  }
  0x17   :  { %71 = dma.done.wait [#allocation3], 32  }
  0x18   :  { %72 = vsyncadd [#allocation3], 4294967264 }
  0x19   :  { %49 = vsyncpa [#allocation3], 1 }

// kernel: resnet_bottom_forward.5
= control target key start
LH: loop header
LB: loop body
LE: loop exit
PB: predicated region body
PF: predicated region fallthrough
CT: control target
= control target key end

     0   :  { %v145_v10 = vlaneseq  ;;  %s288_s1 = inlined_call_operand.vmem [shape: bf16[128,128], index: 1, kind: input, shape index: {}]   ;;  %s289_s0 = inlined_call_operand.vmem [shape: bf16[32,128], index: 0, kind: input, shape index: {}]   ;;  %s290_s2 = inlined_call_operand.vmem [shape: f32[2,128], index: 2, kind: input, shape index: {}]   ;;  %s291_s3 = inlined_call_operand.vmem [shape: f32[32,128], index: 3, kind: output, shape index: {}]  }
   0x1   :  { %v213_v0 = vld [vmem:[%s288_s1 + $0x38] sm:$0xff]   ;;  %v214_v1 = vld [vmem:[%s288_s1 + $0x30] sm:$0xff]   ;;  %v215_v2 = vld [vmem:[%s288_s1 + $0x28] sm:$0xff]  }
   0x2   :  { %193 = vmatprep.subr.bf16.mxu0 %v213_v0  ;;  %v216_v3 = vld [vmem:[%s288_s1 + $0x20] sm:$0xff]   ;;  %v217_v5 = vld [vmem:[%s288_s1 + $0x18] sm:$0xff]   ;;  %v218_v6 = vld [vmem:[%s288_s1 + $0x10] sm:$0xff]   ;;  %v146_v11 = vshrl.u32 %v145_v10, 7 }
   0x3   :  { %194 = vmatpush3.bf16.msra.mxu0 %v213_v0  ;;  %v221_v4 = vld [vmem:[%s289_s0] sm:$0xff]   ;;  %v219_v7 = vld [vmem:[%s288_s1 + $0x8] sm:$0xff]  }
   0x4   :  { %195 = vmatprep.subr.bf16.mxu0 %v214_v1  ;;  %209 = vmatprep.mubr.bf16.mxu0 %v221_v4  ;;  %v220_v8 = vld [vmem:[%s288_s1] sm:$0xff]   ;;  %v222_v9 = vld [vmem:[%s289_s0 + $0x8] sm:$0xff]   ;;  %v147_v12 = vsub.s32 0, %v146_v11  ;;  %v155_v14 = vsub.s32 1, %v146_v11 }
   0x5   :  { %v144_v13 = vld [vmem:[%s290_s2] sm:$0x3] }
   0x6   :  { %v148_v15 = vrot.slane %v144_v13, %v147_v12  ;;  %v156_v16 = vrot.slane %v144_v13, %v155_v14 }
   0x7   :  { %196 = vmatpush3.bf16.msra.mxu0 %v214_v1 }
   0x8   :  { %197 = vmatprep.subr.bf16.mxu0 %v215_v2 }
   0xb   :  { %198 = vmatpush3.bf16.msra.mxu0 %v215_v2 }
   0xc   :  { %199 = vmatprep.subr.bf16.mxu0 %v216_v3 }
   0xf   :  { %200 = vmatpush3.bf16.msra.mxu0 %v216_v3 }
  0x10   :  { %201 = vmatprep.subr.bf16.mxu0 %v217_v5 }
  0x13   :  { %202 = vmatpush3.bf16.msra.mxu0 %v217_v5 }
  0x14   :  { %203 = vmatprep.subr.bf16.mxu0 %v218_v6 }
  0x17   :  { %204 = vmatpush3.bf16.msra.mxu0 %v218_v6 }
  0x18   :  { %205 = vmatprep.subr.bf16.mxu0 %v219_v7 }
  0x1b   :  { %206 = vmatpush3.bf16.msra.mxu0 %v219_v7 }
  0x1c   :  { %207 = vmatprep.subr.bf16.mxu0 %v220_v8 }
  0x1f   :  { %208 = vmatpush3.bf16.msra.mxu0 %v220_v8 }
  0x22   :  { %210 = vmatmul.mubr.bf16.vlgmr.msra.gmra.mxu0 %v222_v9 }
  0xe2   :  { %v211_v17 = vpop.f32.mrf.mxu0 }
  0xe3   :  { %v151_v18 = vmul.f32 %v211_v17, %v148_v15 }
  0xe4   :  { %v129_v19 = vpop.f32.mrf.mxu0 }
  0xe5   :  { %v159_v20 = vadd.f32 %v156_v16, %v151_v18  ;;  %v149_v21 = vmul.f32 %v148_v15, %v129_v19 }
  0xe6   :  { %v212_v22 = vpop.f32.mrf.mxu0 }
  0xe7   :  { %v163_v23 = vmax.f32 %v159_v20, 0.0  ;;  %v157_v24 = vadd.f32 %v156_v16, %v149_v21  ;;  %v152_v25 = vmul.f32 %v212_v22, %v148_v15 }
  0xe8   :  { %v132_v26 = vpop.f32.mrf.mxu0 }
  0xe9   :  { %167 = vst [vmem:[%s291_s3 + $0x10] sm:$0xff] %v163_v23  ;;  %v161_v27 = vmax.f32 %v157_v24, 0.0  ;;  %v160_v28 = vadd.f32 %v156_v16, %v152_v25  ;;  %v150_v29 = vmul.f32 %v148_v15, %v132_v26 }
  0xeb   :  { %165 = vst [vmem:[%s291_s3] sm:$0xff] %v161_v27  ;;  %v164_v30 = vmax.f32 %v160_v28, 0.0  ;;  %v158_v31 = vadd.f32 %v156_v16, %v150_v29 }
  0xed   :  { %168 = vst [vmem:[%s291_s3 + $0x18] sm:$0xff] %v164_v30  ;;  %v162_v32 = vmax.f32 %v158_v31, 0.0 }
  0xef   :  { %166 = vst [vmem:[%s291_s3 + $0x8] sm:$0xff] %v162_v32 }

// kernel: resnet_bottom_forward.6
= control target key start
LH: loop header
LB: loop body
LE: loop exit
PB: predicated region body
PF: predicated region fallthrough
CT: control target
= control target key end

     0   :  { %v148_v10 = vlaneseq  ;;  %s316_s1 = inlined_call_operand.vmem [shape: bf16[128,128], index: 1, kind: input, shape index: {}]   ;;  %s317_s0 = inlined_call_operand.vmem [shape: bf16[32,128], index: 0, kind: input, shape index: {}]   ;;  %s318_s2 = inlined_call_operand.vmem [shape: f32[2,128], index: 2, kind: input, shape index: {}]   ;;  %s319_s3 = inlined_call_operand.vmem [shape: f32[32,128], index: 3, kind: input, shape index: {}]   ;;  %s320_s4 = inlined_call_operand.vmem [shape: f32[32,128], index: 4, kind: output, shape index: {}]  }
   0x1   :  { %v224_v0 = vld [vmem:[%s316_s1 + $0x38] sm:$0xff]   ;;  %v225_v1 = vld [vmem:[%s316_s1 + $0x30] sm:$0xff]   ;;  %v226_v2 = vld [vmem:[%s316_s1 + $0x28] sm:$0xff]  }
   0x2   :  { %204 = vmatprep.subr.bf16.mxu0 %v224_v0  ;;  %v227_v3 = vld [vmem:[%s316_s1 + $0x20] sm:$0xff]   ;;  %v228_v5 = vld [vmem:[%s316_s1 + $0x18] sm:$0xff]   ;;  %v229_v6 = vld [vmem:[%s316_s1 + $0x10] sm:$0xff]   ;;  %v149_v11 = vshrl.u32 %v148_v10, 7 }
   0x3   :  { %205 = vmatpush3.bf16.msra.mxu0 %v224_v0  ;;  %v232_v4 = vld [vmem:[%s317_s0] sm:$0xff]   ;;  %v230_v7 = vld [vmem:[%s316_s1 + $0x8] sm:$0xff]   ;;  %v166_v19 = vld [vmem:[%s319_s3 + $0x10] sm:$0xff] }
   0x4   :  { %206 = vmatprep.subr.bf16.mxu0 %v225_v1  ;;  %220 = vmatprep.mubr.bf16.mxu0 %v232_v4  ;;  %v231_v8 = vld [vmem:[%s316_s1] sm:$0xff]   ;;  %v233_v9 = vld [vmem:[%s317_s0 + $0x8] sm:$0xff]   ;;  %v150_v12 = vsub.s32 0, %v149_v11  ;;  %v158_v14 = vsub.s32 1, %v149_v11  ;;  %v167_v28 = vld [vmem:[%s319_s3 + $0x18] sm:$0xff] }
   0x5   :  { %v147_v13 = vld [vmem:[%s318_s2] sm:$0x3]  ;;  %v165_v34 = vld [vmem:[%s319_s3 + $0x8] sm:$0xff] }
   0x6   :  { %v151_v15 = vrot.slane %v147_v13, %v150_v12  ;;  %v159_v16 = vrot.slane %v147_v13, %v158_v14  ;;  %v164_v23 = vld [vmem:[%s319_s3] sm:$0xff] }
   0x7   :  { %207 = vmatpush3.bf16.msra.mxu0 %v225_v1 }
   0x8   :  { %208 = vmatprep.subr.bf16.mxu0 %v226_v2 }
   0xb   :  { %209 = vmatpush3.bf16.msra.mxu0 %v226_v2 }
   0xc   :  { %210 = vmatprep.subr.bf16.mxu0 %v227_v3 }
   0xf   :  { %211 = vmatpush3.bf16.msra.mxu0 %v227_v3 }
  0x10   :  { %212 = vmatprep.subr.bf16.mxu0 %v228_v5 }
  0x13   :  { %213 = vmatpush3.bf16.msra.mxu0 %v228_v5 }
  0x14   :  { %214 = vmatprep.subr.bf16.mxu0 %v229_v6 }
  0x17   :  { %215 = vmatpush3.bf16.msra.mxu0 %v229_v6 }
  0x18   :  { %216 = vmatprep.subr.bf16.mxu0 %v230_v7 }
  0x1b   :  { %217 = vmatpush3.bf16.msra.mxu0 %v230_v7 }
  0x1c   :  { %218 = vmatprep.subr.bf16.mxu0 %v231_v8 }
  0x1f   :  { %219 = vmatpush3.bf16.msra.mxu0 %v231_v8 }
  0x22   :  { %221 = vmatmul.mubr.bf16.vlgmr.msra.gmra.mxu0 %v233_v9 }
  0xe2   :  { %v222_v17 = vpop.f32.mrf.mxu0 }
  0xe3   :  { %v154_v18 = vmul.f32 %v222_v17, %v151_v15 }
  0xe4   :  { %v132_v20 = vpop.f32.mrf.mxu0 }
  0xe5   :  { %v162_v21 = vadd.f32 %v159_v16, %v154_v18  ;;  %v152_v22 = vmul.f32 %v151_v15, %v132_v20 }
  0xe6   :  { %v223_v24 = vpop.f32.mrf.mxu0 }
  0xe7   :  { %v170_v25 = vadd.f32 %v166_v19, %v162_v21  ;;  %v160_v26 = vadd.f32 %v159_v16, %v152_v22  ;;  %v155_v27 = vmul.f32 %v223_v24, %v151_v15 }
  0xe8   :  { %v135_v29 = vpop.f32.mrf.mxu0 }
  0xe9   :  { %v174_v30 = vmax.f32 %v170_v25, 0.0  ;;  %v168_v31 = vadd.f32 %v164_v23, %v160_v26  ;;  %v163_v32 = vadd.f32 %v159_v16, %v155_v27  ;;  %v153_v33 = vmul.f32 %v151_v15, %v135_v29 }
  0xeb   :  { %178 = vst [vmem:[%s320_s4 + $0x10] sm:$0xff] %v174_v30  ;;  %v172_v35 = vmax.f32 %v168_v31, 0.0  ;;  %v171_v36 = vadd.f32 %v167_v28, %v163_v32  ;;  %v161_v37 = vadd.f32 %v159_v16, %v153_v33 }
  0xed   :  { %176 = vst [vmem:[%s320_s4] sm:$0xff] %v172_v35  ;;  %v175_v38 = vmax.f32 %v171_v36, 0.0  ;;  %v169_v39 = vadd.f32 %v165_v34, %v161_v37 }
  0xef   :  { %179 = vst [vmem:[%s320_s4 + $0x18] sm:$0xff] %v175_v38  ;;  %v173_v40 = vmax.f32 %v169_v39, 0.0 }
  0xf1   :  { %177 = vst [vmem:[%s320_s4 + $0x8] sm:$0xff] %v173_v40 }

</bundles_post_ra>
